<compile_context>
chip_gen: v5e
topology: v5e:2x2
jax: 0.10.0
libtpu: 0.0.40
codegen_flags: <defaults>
</compile_context>

<pallas_src>
import jax
import jax.numpy as jnp
import numpy as np
from jax.experimental import pallas as pl
from jax.experimental.pallas import tpu as pltpu


def _round_up(a, b):
    return (a + b - 1) // b * b


def _vmem_budgets():
    """Generation-aware sizing: returns (vmem_limit_bytes, block_budget_bytes)."""
    phys = 64 * 1024 * 1024  # conservative fallback = v7x-sized physical VMEM
    try:
        info = pltpu.get_tpu_info()
        cap = getattr(info, "vmem_capacity_bytes", None)
        if cap:
            phys = int(cap)
    except Exception:
        pass
    if phys >= 100 * 1024 * 1024:                 # v5e / v6e: 128 MiB physical VMEM
        return 64 * 1024 * 1024, 44 * 1024 * 1024
    return 32 * 1024 * 1024, 22 * 1024 * 1024     # v7x: 64 MiB physical VMEM


def _mconv_matmul_kernel(w_ref, b_ref, x_ref, o_ref, acc_ref):
    # w_ref : (1, M_pad, tk)  per-instance weight K-slice (resident over j if num_kb==1)
    # b_ref : (1, M_pad, 1)   per-instance bias, f32 (resident)
    # x_ref : (1, tk, tn)     im2col slab tile (lane-dense N)
    # o_ref : (1, M_pad, tn)  output tile
    # acc_ref: (M_pad, tn)    f32 accumulator scratch
    kb = pl.program_id(2)

    @pl.when(kb == 0)
    def _():
        acc_ref[...] = jnp.zeros_like(acc_ref)

    acc_ref[...] += jnp.dot(w_ref[0], x_ref[0], preferred_element_type=jnp.float32)

    @pl.when(kb == pl.num_programs(2) - 1)
    def _():
        o_ref[0] = (acc_ref[...] + b_ref[0]).astype(o_ref.dtype)


def multiple_conv_forward(x, weight, bias, *, kernel_size, use_bf16_mxu=True,
                          out_dtype=None):
    """Forward of MultipleConv.

    x:      (bs, n, c_in, H, W)
    weight: (n, dim_out, c_in, k, k)   (PyTorch grouped-conv weight per instance)
    bias:   (n, dim_out)
    returns (bs, n, dim_out, Ho, Wo) for stride=2, padding=(k-1)//2.
    """
    bs, n, c_in, H, W = x.shape
    dim_out = weight.shape[1]
    k = kernel_size
    stride = 2
    p = (k - 1) // 2
    Ho = (H + 2 * p - k) // stride + 1
    Wo = (W + 2 * p - k) // stride + 1

    out_dtype = x.dtype if out_dtype is None else out_dtype
    compute_dtype = jnp.bfloat16 if use_bf16_mxu else x.dtype
    xb = np.dtype(compute_dtype).itemsize      # slab / weight bytes per element
    ob = np.dtype(out_dtype).itemsize          # output bytes per element
    kpack = 8 * (4 // xb)                      # 8 for f32, 16 for bf16 sublane packing

    # ---- wrapper-side im2col (cast FIRST so the slab hits HBM at half width) ----
    xc = x.astype(compute_dtype)
    xp = jnp.pad(xc, ((0, 0), (0, 0), (0, 0), (p, p), (p, p)))
    taps = []
    for kh in range(k):
        for kw in range(k):
            taps.append(jax.lax.slice(
                xp,
                (0, 0, 0, kh, kw),
                (bs, n, c_in,
                 kh + stride * (Ho - 1) + 1,
                 kw + stride * (Wo - 1) + 1),
                (1, 1, 1, stride, stride)))                 # (bs, n, c_in, Ho, Wo)
    patches = jnp.stack(taps, axis=3)                       # (bs, n, c_in, k*k, Ho, Wo)
    patches = patches.transpose(1, 2, 3, 0, 4, 5)           # (n, c_in, k*k, bs, Ho, Wo)
    K = c_in * k * k
    N = bs * Ho * Wo
    patches = patches.reshape(n, K, N)

    # ---- padding / tiling, sized against a generation-aware VMEM budget ----
    M_pad = _round_up(dim_out, kpack)
    K_pad = _round_up(K, kpack)
    vmem_limit, block_budget = _vmem_budgets()

    def _blocks_bytes(tk, tn):
        return (2 * M_pad * tk * xb          # weight block  (double-buffered)
                + 2 * tk * tn * xb           # slab tile     (double-buffered)
                + 2 * M_pad * tn * ob        # output tile   (double-buffered)
                + M_pad * tn * 4             # f32 accumulator scratch
                + 2 * M_pad * 4)             # bias

    # K tiling: keep the whole K resident when it fits; otherwise split into
    # 128-multiples and accumulate over the extra (innermost) grid axis.
    tk = K_pad
    if _blocks_bytes(tk, 128) > block_budget:
        tk = 128
        while 2 * tk < K_pad and _blocks_bytes(2 * tk, 128) <= block_budget:
            tk *= 2
        K_pad = _round_up(K, tk)
    num_kb = K_pad // tk

    # N tiling: biggest lane-dense tile that fits the remaining budget.
    avail = max(block_budget - 2 * M_pad * tk * xb - 2 * M_pad * 4, 0)
    per_lane = 2 * tk * xb + 2 * M_pad * ob + 4 * M_pad
    tn = (avail // per_lane) // 128 * 128
    tn = max(128, min(tn, 16384, _round_up(N, 128)))
    nj = pl.cdiv(N, tn)                      # even out tiles so the tail isn't padding
    tn = _round_up(pl.cdiv(N, nj), 128)
    N_pad = _round_up(N, tn)

    patches = jnp.pad(patches, ((0, 0), (0, K_pad - K), (0, N_pad - N)))
    w_r = weight.astype(compute_dtype).reshape(n, dim_out, K)
    w_r = jnp.pad(w_r, ((0, 0), (0, M_pad - dim_out), (0, K_pad - K)))
    b_r = jnp.pad(bias.astype(jnp.float32), ((0, 0), (0, M_pad - dim_out)))
    b_r = b_r.reshape(n, M_pad, 1)

    out_p = pl.pallas_call(
        _mconv_matmul_kernel,
        out_shape=jax.ShapeDtypeStruct((n, M_pad, N_pad), out_dtype),
        grid=(n, N_pad // tn, num_kb),
        in_specs=[
            pl.BlockSpec((1, M_pad, tk), lambda i, j, kb: (i, 0, kb)),  # weight
            pl.BlockSpec((1, M_pad, 1), lambda i, j, kb: (i, 0, 0)),    # bias (resident)
            pl.BlockSpec((1, tk, tn), lambda i, j, kb: (i, kb, j)),     # im2col slab
        ],
        out_specs=pl.BlockSpec((1, M_pad, tn), lambda i, j, kb: (i, 0, j)),
        scratch_shapes=[pltpu.VMEM((M_pad, tn), jnp.float32)],
        compiler_params=pltpu.CompilerParams(
            dimension_semantics=("parallel", "parallel", "arbitrary"),
            vmem_limit_bytes=vmem_limit),
    )(w_r, b_r, patches)

    # Un-pad and restore the (bs, n, dim_out, Ho, Wo) layout.
    out = out_p[:, :dim_out, :N].reshape(n, dim_out, bs, Ho, Wo)
    return out.transpose(2, 0, 1, 3, 4)


if __name__ == "__main__":
    # Small deterministic example: n_instances=3, dim_in=4, dim_out=5, kernel_size=3.
    bs, n, c_in, dim_out, k, H, W = 2, 3, 4, 5, 3, 16, 16
    key = jax.random.PRNGKey(0)
    kx, kw_, kb_ = jax.random.split(key, 3)
    x = jax.random.normal(kx, (bs, n, c_in, H, W), dtype=jnp.float32)
    weight = 0.1 * jax.random.normal(kw_, (n, dim_out, c_in, k, k), dtype=jnp.float32)
    bias = 0.1 * jax.random.normal(kb_, (n, dim_out), dtype=jnp.float32)

    # Reference: grouped stride-2 conv exactly as nn.Conv2d(groups=n).
    p = (k - 1) // 2
    Ho = (H + 2 * p - k) // 2 + 1
    Wo = (W + 2 * p - k) // 2 + 1
    xr = x.reshape(bs, n * c_in, H, W)
    wr = weight.reshape(n * dim_out, c_in, k, k)
    ref = jax.lax.conv_general_dilated(
        xr, wr, window_strides=(2, 2), padding=[(p, p), (p, p)],
        dimension_numbers=("NCHW", "OIHW", "NCHW"), feature_group_count=n)
    ref = (ref + bias.reshape(1, n * dim_out, 1, 1)).reshape(bs, n, dim_out, Ho, Wo)

    fwd = jax.jit(multiple_conv_forward,
                  static_argnames=("kernel_size", "use_bf16_mxu", "out_dtype"))

    # Strict check with f32 MXU operands.
    out_f32 = jax.block_until_ready(
        fwd(x, weight, bias, kernel_size=k, use_bf16_mxu=False))
    assert out_f32.shape == (bs, n, dim_out, Ho, Wo), out_f32.shape
    err_f32 = float(jnp.abs(out_f32 - ref).max())
    assert jnp.allclose(out_f32, ref, atol=1e-3, rtol=1e-3), err_f32

    # Default fast path: bf16 slab/weights on the MXU, f32 accumulation
    # (validated at a looser tolerance by design).
    out_bf16 = jax.block_until_ready(fwd(x, weight, bias, kernel_size=k))
    err_bf16 = float(jnp.abs(out_bf16 - ref).max())
    assert jnp.allclose(out_bf16, ref, atol=5e-2, rtol=5e-2), err_bf16

    print("KERNEL_OK")
</pallas_src>

<mosaic_0001>
module attributes {stable_mosaic.version = 11 : i64} {
  func.func @_mconv_matmul_kernel(%arg0: i32, %arg1: i32, %arg2: i32, %arg3: memref<1x8x40xf32, #tpu.memory_space<vmem>>, %arg4: memref<1x8x1xf32, #tpu.memory_space<vmem>>, %arg5: memref<1x40x128xf32, #tpu.memory_space<vmem>>, %arg6: memref<1x8x128xf32, #tpu.memory_space<vmem>>, %arg7: memref<8x128xf32, #tpu.memory_space<vmem>>) attributes {dimension_semantics = [#tpu.dimension_semantics<parallel>, #tpu.dimension_semantics<parallel>, #tpu.dimension_semantics<arbitrary>], iteration_bounds = array<i64: 3, 1, 1>, scalar_prefetch = 0 : i64, scratch_operands = 1 : i64, tpu.core_type = #tpu.core_type<tc>, window_params = [{transform_indices = @transform_0, window_bounds = array<i64: 1, 8, 40>}, {transform_indices = @transform_1, window_bounds = array<i64: 1, 8, 1>}, {transform_indices = @transform_2, window_bounds = array<i64: 1, 40, 128>}, {transform_indices = @transform_3, window_bounds = array<i64: 1, 8, 128>}]} {
    %c0_i32 = arith.constant 0 : i32
    %0 = arith.cmpi eq, %arg2, %c0_i32 : i32
    %1 = arith.extui %0 : i1 to i32
    %c0_i32_0 = arith.constant 0 : i32
    %2 = arith.cmpi ne, %1, %c0_i32_0 : i32
    scf.if %2 {
      %cst_12 = arith.constant 0.000000e+00 : f32
      %14 = vector.broadcast %cst_12 : f32 to vector<8x128xf32>
      %c0_13 = arith.constant 0 : index
      %c0_14 = arith.constant 0 : index
      %15 = vector.load %arg7[%c0_13, %c0_14] : memref<8x128xf32, #tpu.memory_space<vmem>>, vector<8x128xf32>
      tpu.vector_store %arg7[%c0_13, %c0_14], %14 {strides = array<i32>} : memref<8x128xf32, #tpu.memory_space<vmem>>, vector<8x128xf32>,
    } else {
    }
    %c0 = arith.constant 0 : index
    %c0_1 = arith.constant 0 : index
    %3 = vector.load %arg7[%c0, %c0_1] : memref<8x128xf32, #tpu.memory_space<vmem>>, vector<8x128xf32>
    %c0_2 = arith.constant 0 : index
    %c0_3 = arith.constant 0 : index
    %c0_4 = arith.constant 0 : index
    %4 = vector.load %arg3[%c0_2, %c0_3, %c0_4] : memref<1x8x40xf32, #tpu.memory_space<vmem>>, vector<1x8x40xf32>
    %5 = vector.shape_cast %4 : vector<1x8x40xf32> to vector<8x40xf32>
    %c0_5 = arith.constant 0 : index
    %c0_6 = arith.constant 0 : index
    %c0_7 = arith.constant 0 : index
    %6 = vector.load %arg5[%c0_5, %c0_6, %c0_7] : memref<1x40x128xf32, #tpu.memory_space<vmem>>, vector<1x40x128xf32>
    %7 = vector.shape_cast %6 : vector<1x40x128xf32> to vector<40x128xf32>
    %cst = arith.constant dense<0.000000e+00> : vector<8x128xf32>
    %8 = tpu.matmul %5, %7, %cst {dimension_numbers = #tpu.dot_dimension_numbers<[1], [0], [0], [1], [0, 0, 1, 1], [], []>} : vector<8x40xf32>, vector<40x128xf32>, vector<8x128xf32> -> vector<8x128xf32>
    %9 = arith.addf %3, %8 : vector<8x128xf32>
    %c0_8 = arith.constant 0 : index
    %c0_9 = arith.constant 0 : index
    %10 = vector.load %arg7[%c0_8, %c0_9] : memref<8x128xf32, #tpu.memory_space<vmem>>, vector<8x128xf32>
    tpu.vector_store %arg7[%c0_8, %c0_9], %9 {strides = array<i32>} : memref<8x128xf32, #tpu.memory_space<vmem>>, vector<8x128xf32>,
    %c0_i32_10 = arith.constant 0 : i32
    %11 = arith.cmpi eq, %arg2, %c0_i32_10 : i32
    %12 = arith.extui %11 : i1 to i32
    %c0_i32_11 = arith.constant 0 : i32
    %13 = arith.cmpi ne, %12, %c0_i32_11 : i32
    scf.if %13 {
      %c0_12 = arith.constant 0 : index
      %c0_13 = arith.constant 0 : index
      %14 = vector.load %arg7[%c0_12, %c0_13] : memref<8x128xf32, #tpu.memory_space<vmem>>, vector<8x128xf32>
      %c0_14 = arith.constant 0 : index
      %c0_15 = arith.constant 0 : index
      %c0_16 = arith.constant 0 : index
      %15 = vector.load %arg4[%c0_14, %c0_15, %c0_16] : memref<1x8x1xf32, #tpu.memory_space<vmem>>, vector<1x8x1xf32>
      %16 = vector.shape_cast %15 : vector<1x8x1xf32> to vector<8x1xf32>
      %17 = vector.broadcast %16 : vector<8x1xf32> to vector<8x128xf32>
      %18 = arith.addf %14, %17 : vector<8x128xf32>
      %c0_17 = arith.constant 0 : index
      %c0_18 = arith.constant 0 : index
      %c0_19 = arith.constant 0 : index
      %19 = vector.load %arg6[%c0_17, %c0_18, %c0_19] : memref<1x8x128xf32, #tpu.memory_space<vmem>>, vector<1x8x128xf32>
      %20 = vector.shape_cast %19 : vector<1x8x128xf32> to vector<8x128xf32>
      %21 = vector.shape_cast %18 : vector<8x128xf32> to vector<1x8x128xf32>
      tpu.vector_store %arg6[%c0_17, %c0_18, %c0_19], %21 {strides = array<i32>} : memref<1x8x128xf32, #tpu.memory_space<vmem>>, vector<1x8x128xf32>,
    } else {
    }
    return
  }
  func.func @transform_0(%arg0: i32, %arg1: i32, %arg2: i32) -> (i32, i32, i32) {
    %c0_i32 = arith.constant 0 : i32
    %c0_i32_0 = arith.constant 0 : i32
    return %arg0, %c0_i32, %arg2 : i32, i32, i32
  }
  func.func @transform_1(%arg0: i32, %arg1: i32, %arg2: i32) -> (i32, i32, i32) {
    %c0_i32 = arith.constant 0 : i32
    %c0_i32_0 = arith.constant 0 : i32
    %c0_i32_1 = arith.constant 0 : i32
    return %arg0, %c0_i32, %c0_i32_0 : i32, i32, i32
  }
  func.func @transform_2(%arg0: i32, %arg1: i32, %arg2: i32) -> (i32, i32, i32) {
    %c0_i32 = arith.constant 0 : i32
    return %arg0, %arg2, %arg1 : i32, i32, i32
  }
  func.func @transform_3(%arg0: i32, %arg1: i32, %arg2: i32) -> (i32, i32, i32) {
    %c0_i32 = arith.constant 0 : i32
    %c0_i32_0 = arith.constant 0 : i32
    return %arg0, %c0_i32, %arg1 : i32, i32, i32
  }
}

</mosaic_0001>

<bundles_post_ra>
// kernel: multiple_conv_forward.1
= control target key start
LH: loop header
LB: loop body
LE: loop exit
PB: predicated region body
PF: predicated region fallthrough
CT: control target
= control target key end

     0   :  { %s512_s12 = smov 0   ;;  %s514_s13 = smov 0   ;;  %s551_s0 = inlined_call_operand.vmem [shape: f32[3,8,40], index: 0, kind: input, shape index: {}]   ;;  %s552_s1 = inlined_call_operand.vmem [shape: f32[3,8,1], index: 1, kind: input, shape index: {}]   ;;  %s553_s2 = inlined_call_operand.vmem [shape: f32[3,40,128], index: 2, kind: input, shape index: {}]   ;;  %s554_s3 = inlined_call_operand.vmem [shape: f32[3,8,128], index: 3, kind: output, shape index: {}]  }
   0x1   :  { %s516_s14 = smov 0  }
   0x2 LB: > { %s32_s15 = sadd.s32 1, %s485_s13  ;;  %p432_p0 = scmp.ge.s32.totalorder %s489_s14, 1  ;;  %s489_s14 = sphi %s516_s14, %s13_s14   ;;  %s485_s13 = sphi %s514_s13, %s556_s13   ;;  %s481_s12 = sphi %s512_s12, %s555_s12  }
   0x3   : > { %p34_p1 = scmp.ge.s32.totalorder %s32_s15, 3  ;;  %p193_p2 = scmp.lt.s32.totalorder %s489_s14, 4 }
   0x5   : > { %s558_s15 = smov (%p34_p1, %s32_s15), 0  ;;  %p194_p3 = pnand %p432_p0, %p193_p2 }
   0x6   : > { %p237_p4 = scmp.lt.s32.totalorder (!%p194_p3), %s481_s12, 2 }
   0x7   : > { %197 = sbr.rel (%p194_p3) target bundleno = 155 (0x9b), region = 32 }
   0xc   : > { %v491_v0 = vmov 0   ;;  %s560_s12 = smov (!%p237_p4, %s481_s12), 2  ;;  %vm280_vm0 = vcmask 326656  }
   0xd   : > { %466 = vset.pattern.permute.xlu0 %v491_v0  ;;  %s440_s16 = smul.u32 40, %s560_s12  ;;  %s433_s17 = sshll.u32 %s560_s12, 3 }
   0xe   : > { %s247_s20 = scalar_lea.vmem %s552_s1, %s433_s17  ;;  %s243_s26 = scalar_lea.vmem %s551_s0, %s433_s17 }
   0xf   : > { %s259_s23 = scalar_lea.vmem %s553_s2, %s440_s16  ;;  %v310_v1 = vld [vmem:[%s247_s20] sm:$0xff]  ;;  %s267_s29 = scalar_lea.vmem %s554_s3, %s433_s17 }
  0x10   : > { %v279_v2 = vld [vmem:[%s259_s23 + $0x20] sm:$0xff]  ;;  %v278_v3 = vld [vmem:[%s259_s23 + $0x18] sm:$0xff]  ;;  %313 = vperm.xlu0 %466, %v310_v1   ;;  %v277_v4 = vld [vmem:[%s259_s23 + $0x10] sm:$0xff] }
  0x11   : > { %295 = vmatpush.msra.mxu0 %v279_v2  ;;  %v276_v5 = vld [vmem:[%s259_s23 + $0x8] sm:$0xff]  ;;  %v275_v6 = vld [vmem:[%s259_s23] sm:$0xff] }
  0x12   : > { %v274_v7 = vld [vmem:[%s243_s26] sm:$0xff] }
  0x13   : > { %296 = vmatpush.msra.mxu0 %v278_v3 }
  0x15   : > { %297 = vmatpush.msra.mxu0 %v277_v4 }
  0x17   : > { %298 = vmatpush.msra.mxu0 %v276_v5 }
  0x19   : > { %299 = vmatpush.msra.mxu0 %v275_v6 }
  0x1a   : > { %437 = vmatmul.msk.f32.vlgmr.msra.gmra.mxu0 %vm280_vm0, %v274_v7 }
  0x82   : > { %v314_v8 = vpop.permute.xlu0 %313 }
  0x97   : > { %v301_v9 = vpop.f32.mrf.mxu0 }
  0x98   : > { %v316_v10 = vadd.f32 %v314_v8, %v301_v9 }
  0x9a   : > { %317 = vst [vmem:[%s267_s29] sm:$0xff] %v316_v10 }
  0x9b PF: > { %s13_s14 = sadd.s32 1, %s489_s14   ;;  %s555_s12 = smov %s485_s13 }
  0x9c   : > { %p10_p5 = scmp.ge.s32.totalorder %s13_s14, 5   ;;  %s556_s13 = smov %s558_s15 }
  0x9e   :  { %12 = sbr.rel (!%p10_p5) target bundleno = 2 (0x2), region = 76 }

</bundles_post_ra>
